<compile_context>
chip_gen: v7x
topology: tpu7x:2x2x1
jax: 0.10.0
libtpu: 0.0.40
codegen_flags: <defaults>
</compile_context>

<pallas_src>
import functools

import jax
import jax.numpy as jnp
from jax.experimental import pallas as pl
from jax.experimental.pallas import tpu as pltpu

EPS = 1e-5  # BatchNorm eps


# ------------------------------ Pallas kernel --------------------------------

def _convgemm_t_kernel(*refs, act, fuse_bypass):
    """out^T = act(scale * (W^T @ X^T) + offset [+ Wb^T @ P^T])."""
    if fuse_bypass:
        wt_ref, xt_ref, wbt_ref, pt_ref, s_ref, o_ref, out_ref = refs
    else:
        wt_ref, xt_ref, s_ref, o_ref, out_ref = refs

    acc = jnp.dot(wt_ref[...], xt_ref[...], preferred_element_type=jnp.float32)
    y = acc * s_ref[...] + o_ref[...]          # f32 epilogue (per-channel scale/offset)
    if fuse_bypass:
        # bypass 1x1 conv fused: its bias is already folded into `offset`.
        y = y + jnp.dot(wbt_ref[...], pt_ref[...], preferred_element_type=jnp.float32)
    if act == "sigmoid":
        y = jax.nn.sigmoid(y)
    elif act == "relu":
        y = jnp.maximum(y, 0.0)
    out_ref[...] = y.astype(out_ref.dtype)


def _pick_tile(mp):
    """Largest lane tile (<=1024) that divides mp and gives >=2 grid steps."""
    for cand in (1024, 512, 256, 128):
        if mp % cand == 0 and mp // cand >= 2:
            return cand
    return mp  # single block (mp is already a multiple of 128)


def gemm_t(wt, xt, scale, offset, *, wbt=None, pt=None, act="none",
           compute_dtype=jnp.bfloat16):
    """Transposed fused GEMM.

    wt:     (N, K)   conv weight, transposed
    xt:     (K, M)   im2col patches, transposed (M = B*Ho*Wo on lanes)
    scale:  (N,)     folded BN scale
    offset: (N,)     folded conv-bias * scale + BN shift (+ bypass bias)
    wbt/pt: optional fused bypass 1x1 conv: (N, Ci), (Ci, M)
    returns (N, M) float32
    """
    N, K = wt.shape
    K2, M = xt.shape
    assert K == K2
    fuse = wbt is not None

    Mp = ((M + 127) // 128) * 128
    tm = _pick_tile(Mp)

    xt_p = jnp.pad(xt, ((0, 0), (0, Mp - M))).astype(compute_dtype)
    wt_c = wt.astype(compute_dtype)
    s_c = scale.astype(jnp.float32).reshape(N, 1)
    o_c = offset.astype(jnp.float32).reshape(N, 1)

    operands = [wt_c, xt_p]
    in_specs = [
        pl.BlockSpec((N, K), lambda i: (0, 0)),    # full W^T
        pl.BlockSpec((K, tm), lambda i: (0, i)),   # X^T lane tile
    ]
    flops = 2 * N * K * Mp
    bytes_acc = wt_c.size * 2 + xt_p.size * 2 + N * Mp * 4 + 2 * N * 4

    if fuse:
        Ci = wbt.shape[1]
        pt_p = jnp.pad(pt, ((0, 0), (0, Mp - M))).astype(compute_dtype)
        operands += [wbt.astype(compute_dtype), pt_p]
        in_specs += [
            pl.BlockSpec((N, Ci), lambda i: (0, 0)),
            pl.BlockSpec((Ci, tm), lambda i: (0, i)),
        ]
        flops += 2 * N * Ci * Mp
        bytes_acc += wbt.size * 2 + pt_p.size * 2

    operands += [s_c, o_c]
    in_specs += [
        pl.BlockSpec((N, 1), lambda i: (0, 0)),
        pl.BlockSpec((N, 1), lambda i: (0, 0)),
    ]
    transcendentals = N * Mp if act == "sigmoid" else 0

    out = pl.pallas_call(
        functools.partial(_convgemm_t_kernel, act=act, fuse_bypass=fuse),
        out_shape=jax.ShapeDtypeStruct((N, Mp), jnp.float32),
        grid_spec=pltpu.PrefetchScalarGridSpec(
            num_scalar_prefetch=0,
            grid=(Mp // tm,),
            in_specs=in_specs,
            out_specs=pl.BlockSpec((N, tm), lambda i: (0, i)),
        ),
        compiler_params=pltpu.CompilerParams(dimension_semantics=("parallel",)),
        cost_estimate=pl.CostEstimate(flops=int(flops),
                                      transcendentals=int(transcendentals),
                                      bytes_accessed=int(bytes_acc)),
    )(*operands)
    return out[:, :M]


# ------------------------------ plain-JAX glue --------------------------------

def im2col(x, kh, kw, stride):
    """x: (B,H,W,C) -> (B,Ho,Wo,kh*kw*C) patches, (di,dj)-major / C-minor."""
    B, H, W, C = x.shape
    Ho = (H - kh) // stride + 1
    Wo = (W - kw) // stride + 1
    cols = []
    for i in range(kh):
        for j in range(kw):
            cols.append(x[:, i:i + stride * Ho:stride, j:j + stride * Wo:stride, :])
    return jnp.concatenate(cols, axis=-1)


def _bn_scale(gamma):
    # eval-mode BatchNorm with fresh running stats (mean=0, var=1)
    return gamma / jnp.sqrt(1.0 + EPS)


# ------------------------- DownLayerResidual forward --------------------------

def down_layer_residual_pallas(x_nhwc, p):
    """x_nhwc: (B,H,W,Ci) -> (B,H/2,W/2,Co), all heavy math in Pallas kernels."""
    B, H, W, Ci = x_nhwc.shape
    Co = p["wb"].shape[0]
    Ho, Wo = H // 2, W // 2
    M = B * Ho * Wo

    # fold conv bias + BN (and, for the last GEMM, the bypass bias) into scale/offset
    s1 = _bn_scale(p["g1"])
    s2 = _bn_scale(p["g2"])
    off1 = p["b1"] * s1 + p["be1"]
    off2 = p["b2"] * s2 + p["be2"] + p["bb"]

    # transposed GEMM weights: W^T[N, (di,dj,ci)]
    w1t = p["w1"].transpose(0, 2, 3, 1).reshape(Ci, 16 * Ci)   # Conv2d(ci,ci,4,2,1)
    w2t = p["w2"].transpose(0, 2, 3, 1).reshape(Co, 9 * Ci)    # Conv2d(ci,co,3,1,1)
    wbt = p["wb"].reshape(Co, Ci)                              # 1x1 bypass conv

    # bypass: AvgPool2d(2,2); its 1x1 conv + add are fused into the final kernel
    pooled = x_nhwc.reshape(B, Ho, 2, Wo, 2, Ci).mean(axis=(2, 4))
    pt = pooled.reshape(M, Ci).T                               # (Ci, M)

    # resid conv1: 4x4 / stride 2 / pad 1, BN1 + sigmoid fused in the epilogue
    xp = jnp.pad(x_nhwc, ((0, 0), (1, 1), (1, 1), (0, 0)))
    x1t = im2col(xp, 4, 4, 2).reshape(M, 16 * Ci).T            # (16*Ci, M)
    r_t = gemm_t(w1t, x1t, s1, off1, act="sigmoid")            # (Ci, M)

    # resid conv2: 3x3 / stride 1 / pad 1, BN2 + bypass add + final sigmoid fused
    r = r_t.T.reshape(B, Ho, Wo, Ci)
    rp = jnp.pad(r, ((0, 0), (1, 1), (1, 1), (0, 0)))
    x2t = im2col(rp, 3, 3, 1).reshape(M, 9 * Ci).T             # (9*Ci, M)
    out_t = gemm_t(w2t, x2t, s2, off2, wbt=wbt, pt=pt, act="sigmoid")  # (Co, M)

    return out_t.T.reshape(B, Ho, Wo, Co)


def ref_forward(x_nhwc, p):
    """Pure-JAX (no Pallas) float32 reference using lax convs."""
    B, H, W, Ci = x_nhwc.shape
    Co = p["wb"].shape[0]
    Ho, Wo = H // 2, W // 2
    s1, s2 = _bn_scale(p["g1"]), _bn_scale(p["g2"])
    hp = jax.lax.Precision.HIGHEST
    dn = ("NHWC", "HWIO", "NHWC")

    pooled = x_nhwc.reshape(B, Ho, 2, Wo, 2, Ci).mean(axis=(2, 4))
    byp = jnp.einsum("bhwc,oc->bhwo", pooled, p["wb"].reshape(Co, Ci),
                     precision=hp) + p["bb"]

    r = jax.lax.conv_general_dilated(x_nhwc, p["w1"].transpose(2, 3, 1, 0),
                                     (2, 2), ((1, 1), (1, 1)),
                                     dimension_numbers=dn, precision=hp)
    r = jax.nn.sigmoid((r + p["b1"]) * s1 + p["be1"])

    y = jax.lax.conv_general_dilated(r, p["w2"].transpose(2, 3, 1, 0),
                                     (1, 1), ((1, 1), (1, 1)),
                                     dimension_numbers=dn, precision=hp)
    y = (y + p["b2"]) * s2 + p["be2"] + byp
    return jax.nn.sigmoid(y)


# ------------------------------- parameters -----------------------------------

def init_params(key, ci, co):
    ks = jax.random.split(key, 10)

    def rnd(k, shape, fan_in):
        return jax.random.normal(k, shape, jnp.float32) / jnp.sqrt(float(fan_in))

    p = {}
    p["wb"] = rnd(ks[0], (co, ci, 1, 1), ci)            # bypass 1x1 conv
    p["bb"] = 0.1 * jax.random.normal(ks[1], (co,), jnp.float32)
    p["w1"] = rnd(ks[2], (ci, ci, 4, 4), ci * 16)       # Conv2d(ci,ci,4,2,1)
    p["b1"] = 0.1 * jax.random.normal(ks[3], (ci,), jnp.float32)
    p["g1"] = 1.0 + 0.1 * jax.random.normal(ks[4], (ci,), jnp.float32)
    p["be1"] = 0.1 * jax.random.normal(ks[5], (ci,), jnp.float32)
    p["w2"] = rnd(ks[6], (co, ci, 3, 3), ci * 9)        # Conv2d(ci,co,3,1,1)
    p["b2"] = 0.1 * jax.random.normal(ks[7], (co,), jnp.float32)
    p["g2"] = 1.0 + 0.1 * jax.random.normal(ks[8], (co,), jnp.float32)
    p["be2"] = 0.1 * jax.random.normal(ks[9], (co,), jnp.float32)
    return p


# ---------------------------------- main ---------------------------------------

if __name__ == "__main__":
    B, CI, CO, H, W = 2, 4, 8, 32, 32   # small DownLayerResidual(ch_in=4, ch_out=8)

    key = jax.random.PRNGKey(0)
    kp, kx = jax.random.split(key)
    params = init_params(kp, CI, CO)
    x = jax.random.normal(kx, (B, CI, H, W), jnp.float32)   # NCHW, like PyTorch

    x_nhwc = jnp.transpose(x, (0, 2, 3, 1))
    out_nhwc = down_layer_residual_pallas(x_nhwc, params)
    out = jnp.transpose(out_nhwc, (0, 3, 1, 2))             # back to NCHW
    out = jax.block_until_ready(out)

    ref = jnp.transpose(ref_forward(x_nhwc, params), (0, 3, 1, 2))

    assert out.shape == (B, CO, H // 2, W // 2), out.shape
    assert bool(jnp.all(jnp.isfinite(out)))
    max_err = float(jnp.max(jnp.abs(out - ref)))
    # bf16 operands with f32 accumulation + f32 epilogue; sigmoid output in (0,1)
    assert bool(jnp.allclose(out, ref, atol=2e-2, rtol=2e-2)), max_err

    print("KERNEL_OK")
</pallas_src>

<mosaic_0001>
module attributes {stable_mosaic.version = 11 : i64} {
  func.func @_convgemm_t_kernel(%arg0: i32, %arg1: memref<4x64xbf16, #tpu.memory_space<vmem>>, %arg2: memref<64x256xbf16, #tpu.memory_space<vmem>>, %arg3: memref<4x1xf32, #tpu.memory_space<vmem>>, %arg4: memref<4x1xf32, #tpu.memory_space<vmem>>, %arg5: memref<4x256xf32, #tpu.memory_space<vmem>>) attributes {dimension_semantics = [#tpu.dimension_semantics<parallel>], iteration_bounds = array<i64: 2>, scalar_prefetch = 0 : i64, scratch_operands = 0 : i64, tpu.core_type = #tpu.core_type<tc>, window_params = [{pipeline_mode = #tpu.pipeline_mode<synchronous>, transform_indices = @transform_0, window_bounds = array<i64: 4, 64>}, {transform_indices = @transform_1, window_bounds = array<i64: 64, 256>}, {pipeline_mode = #tpu.pipeline_mode<synchronous>, transform_indices = @transform_2, window_bounds = array<i64: 4, 1>}, {pipeline_mode = #tpu.pipeline_mode<synchronous>, transform_indices = @transform_3, window_bounds = array<i64: 4, 1>}, {transform_indices = @transform_4, window_bounds = array<i64: 4, 256>}]} {
    %c0 = arith.constant 0 : index
    %c0_0 = arith.constant 0 : index
    %0 = vector.load %arg1[%c0, %c0_0] : memref<4x64xbf16, #tpu.memory_space<vmem>>, vector<4x64xbf16>
    %c0_1 = arith.constant 0 : index
    %c0_2 = arith.constant 0 : index
    %1 = vector.load %arg2[%c0_1, %c0_2] : memref<64x256xbf16, #tpu.memory_space<vmem>>, vector<64x256xbf16>
    %cst = arith.constant dense<0.000000e+00> : vector<4x256xf32>
    %2 = tpu.matmul %0, %1, %cst {dimension_numbers = #tpu.dot_dimension_numbers<[1], [0], [0], [1], [0, 0, 1, 1], [], []>} : vector<4x64xbf16>, vector<64x256xbf16>, vector<4x256xf32> -> vector<4x256xf32>
    %c0_3 = arith.constant 0 : index
    %c0_4 = arith.constant 0 : index
    %3 = vector.load %arg3[%c0_3, %c0_4] : memref<4x1xf32, #tpu.memory_space<vmem>>, vector<4x1xf32>
    %4 = vector.broadcast %3 : vector<4x1xf32> to vector<4x256xf32>
    %5 = arith.mulf %2, %4 : vector<4x256xf32>
    %c0_5 = arith.constant 0 : index
    %c0_6 = arith.constant 0 : index
    %6 = vector.load %arg4[%c0_5, %c0_6] : memref<4x1xf32, #tpu.memory_space<vmem>>, vector<4x1xf32>
    %7 = vector.broadcast %6 : vector<4x1xf32> to vector<4x256xf32>
    %8 = arith.addf %5, %7 : vector<4x256xf32>
    %9 = arith.negf %8 : vector<4x256xf32>
    %10 = math.exp %9 : vector<4x256xf32>
    %cst_7 = arith.constant 1.000000e+00 : f32
    %11 = vector.broadcast %cst_7 : f32 to vector<4x256xf32>
    %12 = arith.addf %11, %10 : vector<4x256xf32>
    %13 = arith.divf %11, %12 : vector<4x256xf32>
    %c0_8 = arith.constant 0 : index
    %c0_9 = arith.constant 0 : index
    %14 = vector.load %arg5[%c0_8, %c0_9] : memref<4x256xf32, #tpu.memory_space<vmem>>, vector<4x256xf32>
    tpu.vector_store %arg5[%c0_8, %c0_9], %13 {strides = array<i32>} : memref<4x256xf32, #tpu.memory_space<vmem>>, vector<4x256xf32>,
    return
  }
  func.func @transform_0(%arg0: i32) -> (i32, i32) {
    %c0_i32 = arith.constant 0 : i32
    %c0_i32_0 = arith.constant 0 : i32
    %c0_i32_1 = arith.constant 0 : i32
    return %c0_i32, %c0_i32_0 : i32, i32
  }
  func.func @transform_1(%arg0: i32) -> (i32, i32) {
    %c0_i32 = arith.constant 0 : i32
    %c0_i32_0 = arith.constant 0 : i32
    return %c0_i32, %arg0 : i32, i32
  }
  func.func @transform_2(%arg0: i32) -> (i32, i32) {
    %c0_i32 = arith.constant 0 : i32
    %c0_i32_0 = arith.constant 0 : i32
    %c0_i32_1 = arith.constant 0 : i32
    return %c0_i32, %c0_i32_0 : i32, i32
  }
  func.func @transform_3(%arg0: i32) -> (i32, i32) {
    %c0_i32 = arith.constant 0 : i32
    %c0_i32_0 = arith.constant 0 : i32
    %c0_i32_1 = arith.constant 0 : i32
    return %c0_i32, %c0_i32_0 : i32, i32
  }
  func.func @transform_4(%arg0: i32) -> (i32, i32) {
    %c0_i32 = arith.constant 0 : i32
    %c0_i32_0 = arith.constant 0 : i32
    return %c0_i32, %arg0 : i32, i32
  }
}

</mosaic_0001>

<bundles_post_ra>
// kernel: tpu_custom_call.1
= control target key start
LH: loop header
LB: loop body
LE: loop exit
PB: predicated region body
PF: predicated region fallthrough
CT: control target
= control target key end

     0   :  { %9 = vsyncpa [#allocation3], 0  ;;  %s830_s0 = inlined_call_operand.vmem [shape: bf16[4,64], index: 0, kind: input, shape index: {}]   ;;  %s831_s1 = inlined_call_operand.hbm [shape: bf16[64,512], index: 1, kind: input, shape index: {}]   ;;  %s832_s2 = inlined_call_operand.vmem [shape: f32[4,1], index: 2, kind: input, shape index: {}]   ;;  %s833_s3 = inlined_call_operand.vmem [shape: f32[4,1], index: 3, kind: input, shape index: {}]   ;;  %s834_s4 = inlined_call_operand.hbm [shape: f32[4,512], index: 4, kind: output, shape index: {}]  }
   0x1   :  { %11 = vsyncpa [#allocation3 + $0x1], 0 }
   0x2   :  { %12 = vsyncpa [#allocation4], 0 }
   0x3   :  { %14 = vsyncpa [#allocation4 + $0x1], 0  ;;  %s658_s15 = smov 0   ;;  %s660_s16 = smov 0  }
   0x4   :  { %s662_s17 = smov 0   ;;  %s664_s18 = smov 0  }
   0x5 LB: > { %s679_s19 = sadd.s32 4294967295, %s625_s18   ;;  %s431_s20 = sadd.s32 4294967294, %s625_s18   ;;  %s625_s18 = sphi %s664_s18, %s848_s18   ;;  %s621_s17 = sphi %s662_s17, %s847_s17   ;;  %s617_s16 = sphi %s660_s16, %s846_s16   ;;  %s613_s15 = sphi %s658_s15, %s845_s15  }
   0x6   : > { %s683_s21 = sadd.s32 1, %s625_s18   ;;  %s48_s22 = sadd.s32 1, %s621_s17 }
   0x7   : > { %s45_s23 = ssub.s32 %s625_s18, %s683_s21  ;;  %p55_p0 = scmp.ne.s32.totalorder %s621_s17, %s617_s16 }
   0x8   : > { %p46_p1 = scmp.eq.s32.totalorder %s45_s23, 0  ;;  %p56_p2 = scmp.eq.s32.totalorder %s625_s18, 0 }
   0x9   : > { %p61_p3 = scmp.ne.s32.totalorder %s617_s16, %s613_s15  ;;  %p62_p4 = scmp.eq.s32.totalorder %s679_s19, 0 }
   0xa   : > { %s695_s24 = scalar_select %p46_p1, %s621_s17, %s48_s22  }
   0xb   : > { %p697_p5 = por %p56_p2, %p55_p0  ;;  %p701_p6 = por %p62_p4, %p61_p3 }
   0xc   : > { %p127_p7 = scmp.eq.s32.totalorder %s679_s19, 1  ;;  %p133_p8 = scmp.eq.s32.totalorder %s431_s20, 1 }
   0xd   : > { %p470_p10 = scmp.lt.s32.totalorder %s625_s18, 2  ;;  %s162_s29 = sand.u32 1, %s621_s17  }
   0xe   : > { %p708_p11 = por %p127_p7, %p55_p0  ;;  %p712_p12 = por %p133_p8, %p61_p3 }
   0xf   : > { %s456_s30 = sshll.u32 %s625_s18, 7  ;;  %s434_s5 = sshll.u32 %s162_s29, 6 }
  0x10   : > { %s838_s27 = scalar_select %p708_p11, 1, 0 }
  0x11   : > { %s839_s28 = scalar_select %p712_p12, 1, 0 }
  0x12   : > { %s721_s8 = scalar_lea.hbm %s831_s1, %s456_s30  ;;  %s166_s9 = scalar_lea.vmem [#allocation2], %s434_s5 }
  0x13   : > { %s173_s10 = sshll.u32 %s166_s9, 4  ;;  %p725_p13 = pnand %p470_p10, %p697_p5  ;;  %s729_s10 = int_to_ptr.vmem [resolvable:$true] %s173_s10 }
  0x14   : > { %s732_s12 = scalar_lea.sflag [#allocation3], %s162_s29  ;;  %s529_s13 = scalar_lea.hbm %s721_s8, 1024 }
  0x15   : > { %p530_p1 = scmp.ne.s32.totalorder %s721_s8, %s529_s13  ;;  %p531_p2 = pneg %p725_p13 }
  0x16   : > { %s534_s22 = scalar_lea.hbm %s831_s1, 2048  ;;  %p535_p5 = scmp.lt.u32.totalorder %s721_s8, %s831_s1 }
  0x17   : > { %p532_p3 = pnand %p531_p2, %p530_p1  ;;  %p536_p7 = scmp.lt.u32.totalorder %s534_s22, %s529_s13 }
  0x18   : > { %p538_p10 = scmp.lt.u32.totalorder %s529_s13, %s721_s8 }
  0x19   : > { %p533_p4 = pneg %p532_p3  ;;  %p537_p8 = por %p536_p7, %p535_p5 }
  0x1b   : > { %p539_p9 = por %p538_p10, %p537_p8 }
  0x1d   : > { %p540_p0 = pnand %p539_p9, %p533_p4 }
  0x1f   : > { %543 = shalt.err (!%p540_p0)
}
  0x20   : > { %s544_s29 = scalar_lea.vmem %s729_s10, 1024  ;;  %s627_s30 = smov [#allocation2]  }
  0x21   : > { %p545_p1 = scmp.ne.s32.totalorder %s729_s10, %s544_s29  ;;  %s549_s5 = sshll.u32 %s627_s30, 4  ;;  %s550_s5 = int_to_ptr.vmem [resolvable:$false] %s549_s5 }
  0x22   : > { %s551_s6 = scalar_lea.vmem %s550_s5, 2048  ;;  %p552_p11 = scmp.lt.s32.totalorder %s729_s10, %s550_s5 }
  0x23   : > { %p547_p3 = pnand %p545_p1, %p531_p2  ;;  %p553_p5 = scmp.lt.s32.totalorder %s551_s6, %s544_s29 }
  0x25   : > { %p548_p12 = pneg %p547_p3  ;;  %p554_p7 = por %p553_p5, %p552_p11 }
  0x27   : > { %p555_p8 = pnand %p554_p7, %p548_p12 }
  0x29   : > { %558 = shalt.err (!%p555_p8)
}
  0x2a   : > { %s628_s7 = smov 256   ;;  %s629_s9 = smov 128  }
  0x2b   : > { %s630_s13 = smov 8   ;;  %p181_p9 = scmp.lt.s32.totalorder %s625_s18, 3 }
  0x2c   : > { %465 = dma.hbm_to_vmem [thread:$0]  (!%p725_p13), %s721_s8, 1024, %s729_s10, %s732_s12, %s628_s7, %s629_s9, %s630_s13  }
  0x2d   : > { %p841_p0 = scmp.ge.s32.totalorder %s625_s18, 1 }
  0x2f   : > { %p182_p2 = pnand %p841_p0, %p181_p9 }
  0x30   : > { %s764_s14 = sand.u32 (!%p182_p2), 1, %s617_s16  }
  0x31   : > { %185 = sbr.rel (%p182_p2) target bundleno = 334 (0x14e), region = 36  ;;  %s438_s20 = sshll.u32 (!%p182_p2), %s764_s14, 6 }
  0x32   : > { %s188_s22 = scalar_lea.sflag (!%p182_p2), [#allocation3], %s764_s14  ;;  %s191_s23 = scalar_lea.vmem (!%p182_p2), [#allocation2], %s438_s20 }
  0x38   : > { %604 = dma.done.wait (%p701_p6), %s188_s22, 1024  }
  0x39   : > { %606 = vsyncadd (%p701_p6), %s188_s22, 4294966272  ;;  %v631_v0 = vmov 0   ;;  %v509_v1 = vld [vmem:[%s191_s23 + $0x4] ss:$8 sps:$4 sm:$0xff]   ;;  %v511_v2 = vld [vmem:[%s191_s23] ss:$8 sps:$4 sm:$0xff]  }
  0x3a   : > { %304 = vmatprep.mubr.bf16.mxu0 %v631_v0  ;;  %508 = vset.pattern.permute.xlu0 %v631_v0  ;;  %v512_v3 = vld [vmem:[%s191_s23 + $0x14] ss:$8 sps:$4 sm:$0xff]   ;;  %v514_v4 = vld [vmem:[%s191_s23 + $0x10] ss:$8 sps:$4 sm:$0xff]   ;;  %v515_v5 = vld [vmem:[%s191_s23 + $0x24] ss:$8 sps:$4 sm:$0xff]  }
  0x3b   : > { %272 = vmatprep.subr.bf16.mxu0 %v509_v1  ;;  %v313_v6 = vld [vmem:[%s832_s2] sm:$0xf]  ;;  %v518_v9 = vld [vmem:[%s191_s23 + $0x34] ss:$8 sps:$4 sm:$0xff]   ;;  %v520_v10 = vld [vmem:[%s191_s23 + $0x30] ss:$8 sps:$4 sm:$0xff]  }
  0x3c   : > { %273 = vmatpush1.bf16.msra.mxu0 %v511_v2  ;;  %316 = vperm.xlu0 %508, %v313_v6   ;;  %v517_v7 = vld [vmem:[%s191_s23 + $0x20] ss:$8 sps:$4 sm:$0xff]   ;;  %vm268_vm0 = vcmask 523264   ;;  %s439_s29 = sshll.u32 %s764_s14, 3  ;;  %s457_s30 = sshll.u32 %s679_s19, 7 }
  0x3d   : > { %274 = vmatprep.subr.bf16.mxu0 %v512_v3  ;;  %v321_v8 = vld [vmem:[%s833_s3] sm:$0xf]  ;;  %s215_s5 = scalar_lea.vmem [#allocation5], %s439_s29  ;;  %s786_s13 = scalar_lea.hbm %s834_s4, %s457_s30 }
  0x3e   : > { %v219_v11 = vld [vmem:[%s830_s0] sm:$0x3]  ;;  %s361_s6 = sshll.u32 %s215_s5, 4  ;;  %s347_s20 = scalar_lea.sflag [#allocation4], %s764_s14  ;;  %s788_s6 = int_to_ptr.vmem [resolvable:$true] %s361_s6 }
  0x3f   : > { %s559_s22 = scalar_lea.vmem %s788_s6, 128  ;;  %p842_p11 = scmp.ne.s32.totalorder %s838_s27, 0 }
  0x40   : > { %275 = vmatpush1.bf16.msra.mxu0 %v514_v4  ;;  %324 = vperm.xlu0 %508, %v321_v8   ;;  %p560_p6 = scmp.ne.s32.totalorder %s788_s6, %s559_s22  ;;  %s632_s19 = smov [#allocation5]  }
  0x41   : > { %276 = vmatprep.subr.bf16.mxu0 %v515_v5  ;;  %s563_s23 = sshll.u32 %s632_s19, 4  ;;  %s564_s23 = int_to_ptr.vmem [resolvable:$false] %s563_s23 }
  0x42   : > { %p561_p12 = pnand %p560_p6, %p842_p11  ;;  %s565_s8 = scalar_lea.vmem %s564_s23, 256 }
  0x43   : > { %p566_p4 = scmp.lt.s32.totalorder %s788_s6, %s564_s23  ;;  %p567_p10 = scmp.lt.s32.totalorder %s565_s8, %s559_s22 }
  0x44   : > { %277 = vmatpush1.bf16.msra.mxu0 %v517_v7  ;;  %p562_p13 = pneg %p561_p12 }
  0x45   : > { %278 = vmatprep.subr.bf16.mxu0 %v518_v9  ;;  %p568_p1 = por %p567_p10, %p566_p4 }
  0x47   : > { %p569_p3 = pnand %p568_p1, %p562_p13 }
  0x48   : > { %279 = vmatpush1.bf16.msra.mxu0 %v520_v10 }
  0x4b   : > { %448 = vmatmul.mubr.msk.bf16.vlgmr.msra.gmra.mrb[0].mxu0 %vm268_vm0, %v219_v11 }
  0xbb   : > { %v317_v12 = vpop.permute.xlu0 %316 }
  0xbf   : > { %v325_v16 = vpop.permute.xlu0 %324 }
 0x11e   : > { %v306_v13 = vpop.f32.mrb[0].mxu0 }
 0x11f   : > { %v319_v14 = vmul.f32 %v317_v12, %v306_v13  ;;  %v308_v15 = vpop.f32.mrb[1].mxu0 }
 0x120   : > { %v320_v17 = vmul.f32 %v317_v12, %v308_v15  ;;  %v310_v18 = vpop.f32.mrb[2].mxu0 }
 0x121   : > { %v327_v19 = vadd.f32 %v325_v16, %v319_v14  ;;  %v311_v20 = vpop.f32.mrb[3].mxu0 }
 0x122   : > { %v328_v21 = vadd.f32 %v325_v16, %v320_v17 }
 0x123   : > { %v449_v22 = vmul.f32 -1.442695, %v327_v19 }
 0x124   : > { %v450_v23 = vmul.f32 -1.442695, %v328_v21 }
 0x125   : > { %521 = vpow2.f32 %v449_v22 }
 0x126   : > { %523 = vpow2.f32 %v450_v23 }
 0x12f   : > { %v522_v24 = vpop.eup %521 }
 0x130   : > { %v524_v25 = vpop.eup %523  ;;  %v335_v26 = vadd.f32 1.0, %v522_v24 }
 0x131   : > { %v336_v27 = vadd.f32 1.0, %v524_v25 }
 0x132   : > { %525 = vrcp.f32 %v335_v26 }
 0x133   : > { %527 = vrcp.f32 %v336_v27 }
 0x13c   : > { %v526_v28 = vpop.eup %525 }
 0x13d   : > { %v528_v29 = vpop.eup %527 }
 0x13e   : > { %v343_v30 = vcombine.low %v526_v28, %v528_v29 }
 0x140   : > { %345 = vst [vmem:[%s215_s5] sm:$0xff] %v343_v30 }
 0x141   : > { %572 = shalt.err (!%p569_p3)
}
 0x142   : > { %s573_s14 = scalar_lea.hbm %s786_s13, 128  ;;  %s577_s11 = scalar_lea.hbm %s834_s4, 256 }
 0x143   : > { %p574_p5 = scmp.ne.s32.totalorder %s786_s13, %s573_s14  ;;  %p578_p9 = scmp.lt.u32.totalorder %s786_s13, %s834_s4 }
 0x144   : > { %p579_p0 = scmp.lt.u32.totalorder %s577_s11, %s573_s14  ;;  %p581_p6 = scmp.lt.u32.totalorder %s573_s14, %s786_s13 }
 0x145   : > { %p575_p7 = pnand %p574_p5, %p842_p11 }
 0x146   : > { %p580_p2 = por %p579_p0, %p578_p9 }
 0x147   : > { %p576_p8 = pneg %p575_p7 }
 0x148   : > { %p582_p12 = por %p581_p6, %p580_p2 }
 0x14a   : > { %p583_p13 = pnand %p582_p12, %p576_p8 }
 0x14c   : > { %586 = shalt.err (!%p583_p13)
}
 0x14d   : > { %460 = dma.vmem_to_hbm [thread:$0]  (%p842_p11), %s788_s6, 128, %s786_s13, %s347_s20  }
 0x14e PF: > { %s373_s29 = sand.u32 1, %s613_s15   ;;  %p843_p4 = scmp.ne.s32.totalorder %s839_s28, 0 }
 0x14f   : > { %p844_p10 = scmp.ge.s32.totalorder %s625_s18, 2  ;;  %s374_s30 = scalar_lea.sflag [#allocation4], %s373_s29 }
 0x151   : > { %p467_p1 = pnand %p844_p10, %p843_p4 }
 0x153   : > { %608 = dma.done.wait (!%p467_p1), %s374_s30, 128  }
 0x154   : > { %610 = vsyncadd (!%p467_p1), %s374_s30, 4294967168  ;;  %p17_p3 = scmp.ge.s32.totalorder %s683_s21, 4   ;;  %s845_s15 = smov %s617_s16 }
 0x155   : > { %s846_s16 = smov %s621_s17  ;;  %s847_s17 = smov %s695_s24 }
 0x156   : > { %s848_s18 = smov %s683_s21  ;;  %19 = sbr.rel (!%p17_p3) target bundleno = 5 (0x5), region = 81 }
 0x15d   :  { %379 = vsyncpa [#allocation3], 1 }
 0x15e   :  { %381 = vsyncpa [#allocation3 + $0x1], 1 }
 0x15f   :  { %382 = vsyncpa [#allocation4], 1 }
 0x160   :  { %384 = vsyncpa [#allocation4 + $0x1], 1 }

</bundles_post_ra>
